<compile_context>
chip_gen: v7x
topology: tpu7x:2x2x1
jax: 0.10.0
libtpu: 0.0.40
codegen_flags: <defaults>
</compile_context>

<pallas_src>
import jax
import jax.numpy as jnp
from jax.experimental import pallas as pl
from jax.experimental.pallas import tpu as pltpu

NEG_SLOPE = 0.01
LANE = 128
SUBLANE = 8


def _leaky_relu(x):
    return jnp.where(x > 0, x, NEG_SLOPE * x)


def _round_up(n, m):
    return ((n + m - 1) // m) * m


def _cdiv(a, b):
    return (a + b - 1) // b


# ----------------------------------------------------------------------------
# Kernel: one batch tile through the full 3-layer MLP.  Weights/biases are
# whole-array VMEM refs (resident, single-buffered); x / out are streamed.
# ----------------------------------------------------------------------------
def qnetwork_kernel(x_ref, w1_ref, b1_ref, w2_ref, b2_ref, w3_ref, b3_ref, o_ref):
    cdt = w1_ref.dtype
    x = x_ref[...].astype(cdt)  # cast in-kernel; no extra XLA op in the wrapper

    # fc_1 + leaky_relu (f32 accumulate, f32 pointwise)
    h1 = jnp.dot(x, w1_ref[...], preferred_element_type=jnp.float32) + b1_ref[...]
    h1 = _leaky_relu(h1).astype(cdt)

    # fc_2 + leaky_relu
    h2 = jnp.dot(h1, w2_ref[...], preferred_element_type=jnp.float32) + b2_ref[...]
    h2 = _leaky_relu(h2).astype(cdt)

    # fc_3 (no activation)
    out = jnp.dot(h2, w3_ref[...], preferred_element_type=jnp.float32) + b3_ref[...]
    o_ref[...] = out.astype(o_ref.dtype)


# ----------------------------------------------------------------------------
# Host-side parameter preparation (run ONCE, outside the hot path).
# Weights are stored [in, out] (transpose of nn.Linear.weight) so the kernel
# computes y = x @ W + b directly on the MXU.  Only OUTPUT feature dims are
# padded (use feature_align=256 on v6e/v7x when hidden_dim > 128 to keep the
# 256-wide MXU fully occupied); layer-1's K dim stays at the real state_dim so
# x never needs lane padding.
# ----------------------------------------------------------------------------
def prepare_params(params, compute_dtype=jnp.bfloat16, feature_align=LANE):
    w1, b1 = params["w1"], params["b1"]
    w2, b2 = params["w2"], params["b2"]
    w3, b3 = params["w3"], params["b3"]
    s, h = w1.shape
    a = w3.shape[1]
    hp = _round_up(h, feature_align)
    ap = _round_up(a, LANE)

    def pad2(arr, rows, cols):
        return jnp.pad(arr, ((0, rows - arr.shape[0]), (0, cols - arr.shape[1])))

    return {
        "w1": pad2(w1, s, hp).astype(compute_dtype),   # (s,  hp)
        "b1": pad2(b1, 1, hp).astype(jnp.float32),     # biases stay f32
        "w2": pad2(w2, hp, hp).astype(compute_dtype),  # (hp, hp)
        "b2": pad2(b2, 1, hp).astype(jnp.float32),
        "w3": pad2(w3, hp, ap).astype(compute_dtype),  # (hp, ap)
        "b3": pad2(b3, 1, ap).astype(jnp.float32),
        "dims": (s, h, a),
        "compute_dtype": compute_dtype,
    }


# ----------------------------------------------------------------------------
# Wrapper: batch-tiled pallas_call with single-buffered resident weights.
# ----------------------------------------------------------------------------
def qnetwork_forward(x, pp, *, batch_tile=1024):
    s, h, a = pp["dims"]
    hp = pp["w2"].shape[0]
    ap = pp["w3"].shape[1]
    batch = x.shape[0]

    # Grid-step count: enough steps that each tile is <= batch_tile rows, and
    # at least 2 steps when the batch is big enough (so v7x's 2nd TC gets work).
    n_steps = max(_cdiv(batch, batch_tile), 2 if batch >= 2 * SUBLANE else 1)
    tb = _round_up(_cdiv(batch, n_steps), SUBLANE)
    bpad = tb * n_steps
    # At most 8*n_steps - 1 zero rows at the REAL feature width; usually none.
    xp = x if bpad == batch else jnp.pad(x, ((0, bpad - batch), (0, 0)))

    # VMEM budget: resident weights/biases (single-buffered) + double-buffered
    # streamed x/out tiles + f32 intermediates, with 2x headroom.  Floor at the
    # universally-safe 32 MiB; capped because v7x has 64 MiB physical per TC.
    def nbytes(arr):
        return arr.size * arr.dtype.itemsize

    w_bytes = sum(nbytes(pp[k]) for k in ("w1", "b1", "w2", "b2", "w3", "b3"))
    stream_bytes = 2 * tb * (s * xp.dtype.itemsize + ap * 4)
    act_bytes = 3 * tb * hp * 4
    vmem_limit = int(min(max(2 * (w_bytes + stream_bytes + act_bytes),
                             32 * 1024 * 1024), 64 * 1024 * 1024))

    # Whole-array VMEM residency: copied in once, NOT double-buffered.
    resident = lambda: pl.BlockSpec(memory_space=pltpu.MemorySpace.VMEM)

    out = pl.pallas_call(
        qnetwork_kernel,
        out_shape=jax.ShapeDtypeStruct((bpad, ap), jnp.float32),
        grid=(n_steps,),
        in_specs=[
            pl.BlockSpec((tb, s), lambda i: (i, 0)),   # streamed x tile, real width
            resident(), resident(),                    # w1, b1
            resident(), resident(),                    # w2, b2
            resident(), resident(),                    # w3, b3
        ],
        out_specs=pl.BlockSpec((tb, ap), lambda i: (i, 0)),  # lane-dense store
        compiler_params=pltpu.CompilerParams(
            dimension_semantics=("parallel",),
            vmem_limit_bytes=vmem_limit,
        ),
    )(xp, pp["w1"], pp["b1"], pp["w2"], pp["b2"], pp["w3"], pp["b3"])

    return out[:batch, :a]


# ----------------------------------------------------------------------------
# Init + pure-JAX reference
# ----------------------------------------------------------------------------
def init_params(key, state_dim, hidden_dim, action_dim):
    """nn.Linear-style init (uniform +-1/sqrt(fan_in)); weights stored [in, out]."""
    ks = jax.random.split(key, 6)

    def linear(kw, kb, fan_in, fan_out):
        bound = 1.0 / jnp.sqrt(fan_in)
        w = jax.random.uniform(kw, (fan_in, fan_out), jnp.float32, -bound, bound)
        b = jax.random.uniform(kb, (1, fan_out), jnp.float32, -bound, bound)
        return w, b

    w1, b1 = linear(ks[0], ks[1], state_dim, hidden_dim)
    w2, b2 = linear(ks[2], ks[3], hidden_dim, hidden_dim)
    w3, b3 = linear(ks[4], ks[5], hidden_dim, action_dim)
    return {"w1": w1, "b1": b1, "w2": w2, "b2": b2, "w3": w3, "b3": b3}


def qnetwork_ref(x, p):
    h1 = _leaky_relu(x @ p["w1"] + p["b1"])
    h2 = _leaky_relu(h1 @ p["w2"] + p["b2"])
    return h2 @ p["w3"] + p["b3"]


if __name__ == "__main__":
    batch, state_dim, hidden_dim, action_dim = 2, 8, 32, 4

    key = jax.random.PRNGKey(0)
    kx, kp = jax.random.split(key)
    x = jax.random.normal(kx, (batch, state_dim), jnp.float32)
    params = init_params(kp, state_dim, hidden_dim, action_dim)
    ref = qnetwork_ref(x, params)

    # Default path: bf16 matmul operands, f32 accumulation / bias / leaky_relu.
    pp_bf16 = prepare_params(params)
    out_bf16 = jax.block_until_ready(qnetwork_forward(x, pp_bf16))
    assert out_bf16.shape == (batch, action_dim)
    assert jnp.allclose(out_bf16, ref, atol=5e-2, rtol=5e-2)

    # Exact f32 path for a tight numerical check of the kernel structure.
    pp_f32 = prepare_params(params, compute_dtype=jnp.float32)
    out_f32 = jax.block_until_ready(qnetwork_forward(x, pp_f32))
    assert out_f32.shape == (batch, action_dim)
    assert jnp.allclose(out_f32, ref, atol=1e-5, rtol=1e-5)

    print("KERNEL_OK")
</pallas_src>

<mosaic_0001>
module attributes {stable_mosaic.version = 11 : i64} {
  func.func @qnetwork_kernel(%arg0: i32, %arg1: memref<8x8xf32, #tpu.memory_space<vmem>>, %arg2: memref<8x128xbf16, #tpu.memory_space<vmem>>, %arg3: memref<1x128xf32, #tpu.memory_space<vmem>>, %arg4: memref<128x128xbf16, #tpu.memory_space<vmem>>, %arg5: memref<1x128xf32, #tpu.memory_space<vmem>>, %arg6: memref<128x128xbf16, #tpu.memory_space<vmem>>, %arg7: memref<1x128xf32, #tpu.memory_space<vmem>>, %arg8: memref<8x128xf32, #tpu.memory_space<vmem>>) attributes {dimension_semantics = [#tpu.dimension_semantics<parallel>], iteration_bounds = array<i64: 1>, scalar_prefetch = 0 : i64, scratch_operands = 0 : i64, tpu.core_type = #tpu.core_type<tc>, window_params = [{transform_indices = @transform_0, window_bounds = array<i64: 8, 8>}, {pipeline_mode = #tpu.pipeline_mode<synchronous>, transform_indices = @transform_1, window_bounds = array<i64: 8, 128>}, {pipeline_mode = #tpu.pipeline_mode<synchronous>, transform_indices = @transform_2, window_bounds = array<i64: 1, 128>}, {pipeline_mode = #tpu.pipeline_mode<synchronous>, transform_indices = @transform_3, window_bounds = array<i64: 128, 128>}, {pipeline_mode = #tpu.pipeline_mode<synchronous>, transform_indices = @transform_4, window_bounds = array<i64: 1, 128>}, {pipeline_mode = #tpu.pipeline_mode<synchronous>, transform_indices = @transform_5, window_bounds = array<i64: 128, 128>}, {pipeline_mode = #tpu.pipeline_mode<synchronous>, transform_indices = @transform_6, window_bounds = array<i64: 1, 128>}, {transform_indices = @transform_7, window_bounds = array<i64: 8, 128>}]} {
    %c0 = arith.constant 0 : index
    %c0_0 = arith.constant 0 : index
    %0 = vector.load %arg1[%c0, %c0_0] : memref<8x8xf32, #tpu.memory_space<vmem>>, vector<8x8xf32>
    %1 = arith.truncf %0 : vector<8x8xf32> to vector<8x8xbf16>
    %c0_1 = arith.constant 0 : index
    %c0_2 = arith.constant 0 : index
    %2 = vector.load %arg2[%c0_1, %c0_2] : memref<8x128xbf16, #tpu.memory_space<vmem>>, vector<8x128xbf16>
    %cst = arith.constant dense<0.000000e+00> : vector<8x128xf32>
    %3 = tpu.matmul %1, %2, %cst {dimension_numbers = #tpu.dot_dimension_numbers<[1], [0], [0], [1], [0, 0, 1, 1], [], []>} : vector<8x8xbf16>, vector<8x128xbf16>, vector<8x128xf32> -> vector<8x128xf32>
    %c0_3 = arith.constant 0 : index
    %c0_4 = arith.constant 0 : index
    %4 = vector.load %arg3[%c0_3, %c0_4] : memref<1x128xf32, #tpu.memory_space<vmem>>, vector<1x128xf32>
    %5 = vector.broadcast %4 : vector<1x128xf32> to vector<8x128xf32>
    %6 = arith.addf %3, %5 : vector<8x128xf32>
    %cst_5 = arith.constant 0.000000e+00 : f32
    %7 = vector.broadcast %cst_5 : f32 to vector<8x128xf32>
    %8 = arith.cmpf ogt, %6, %7 : vector<8x128xf32>
    %cst_6 = arith.constant 0.00999999977 : f32
    %9 = vector.broadcast %cst_6 : f32 to vector<8x128xf32>
    %10 = arith.mulf %9, %6 : vector<8x128xf32>
    %11 = arith.select %8, %6, %10 : vector<8x128xi1>, vector<8x128xf32>
    %12 = arith.truncf %11 : vector<8x128xf32> to vector<8x128xbf16>
    %c0_7 = arith.constant 0 : index
    %c0_8 = arith.constant 0 : index
    %13 = vector.load %arg4[%c0_7, %c0_8] : memref<128x128xbf16, #tpu.memory_space<vmem>>, vector<128x128xbf16>
    %cst_9 = arith.constant dense<0.000000e+00> : vector<8x128xf32>
    %14 = tpu.matmul %12, %13, %cst_9 {dimension_numbers = #tpu.dot_dimension_numbers<[1], [0], [0], [1], [0, 0, 1, 1], [], []>} : vector<8x128xbf16>, vector<128x128xbf16>, vector<8x128xf32> -> vector<8x128xf32>
    %c0_10 = arith.constant 0 : index
    %c0_11 = arith.constant 0 : index
    %15 = vector.load %arg5[%c0_10, %c0_11] : memref<1x128xf32, #tpu.memory_space<vmem>>, vector<1x128xf32>
    %16 = vector.broadcast %15 : vector<1x128xf32> to vector<8x128xf32>
    %17 = arith.addf %14, %16 : vector<8x128xf32>
    %cst_12 = arith.constant 0.000000e+00 : f32
    %18 = vector.broadcast %cst_12 : f32 to vector<8x128xf32>
    %19 = arith.cmpf ogt, %17, %18 : vector<8x128xf32>
    %cst_13 = arith.constant 0.00999999977 : f32
    %20 = vector.broadcast %cst_13 : f32 to vector<8x128xf32>
    %21 = arith.mulf %20, %17 : vector<8x128xf32>
    %22 = arith.select %19, %17, %21 : vector<8x128xi1>, vector<8x128xf32>
    %23 = arith.truncf %22 : vector<8x128xf32> to vector<8x128xbf16>
    %c0_14 = arith.constant 0 : index
    %c0_15 = arith.constant 0 : index
    %24 = vector.load %arg6[%c0_14, %c0_15] : memref<128x128xbf16, #tpu.memory_space<vmem>>, vector<128x128xbf16>
    %cst_16 = arith.constant dense<0.000000e+00> : vector<8x128xf32>
    %25 = tpu.matmul %23, %24, %cst_16 {dimension_numbers = #tpu.dot_dimension_numbers<[1], [0], [0], [1], [0, 0, 1, 1], [], []>} : vector<8x128xbf16>, vector<128x128xbf16>, vector<8x128xf32> -> vector<8x128xf32>
    %c0_17 = arith.constant 0 : index
    %c0_18 = arith.constant 0 : index
    %26 = vector.load %arg7[%c0_17, %c0_18] : memref<1x128xf32, #tpu.memory_space<vmem>>, vector<1x128xf32>
    %27 = vector.broadcast %26 : vector<1x128xf32> to vector<8x128xf32>
    %28 = arith.addf %25, %27 : vector<8x128xf32>
    %c0_19 = arith.constant 0 : index
    %c0_20 = arith.constant 0 : index
    %29 = vector.load %arg8[%c0_19, %c0_20] : memref<8x128xf32, #tpu.memory_space<vmem>>, vector<8x128xf32>
    tpu.vector_store %arg8[%c0_19, %c0_20], %28 {strides = array<i32>} : memref<8x128xf32, #tpu.memory_space<vmem>>, vector<8x128xf32>,
    return
  }
  func.func @transform_0(%arg0: i32) -> (i32, i32) {
    %c0_i32 = arith.constant 0 : i32
    %c0_i32_0 = arith.constant 0 : i32
    return %arg0, %c0_i32 : i32, i32
  }
  func.func @transform_1(%arg0: i32) -> (i32, i32) {
    %c0_i32 = arith.constant 0 : i32
    %c0_i32_0 = arith.constant 0 : i32
    %c0_i32_1 = arith.constant 0 : i32
    return %c0_i32, %c0_i32_0 : i32, i32
  }
  func.func @transform_2(%arg0: i32) -> (i32, i32) {
    %c0_i32 = arith.constant 0 : i32
    %c0_i32_0 = arith.constant 0 : i32
    %c0_i32_1 = arith.constant 0 : i32
    return %c0_i32, %c0_i32_0 : i32, i32
  }
  func.func @transform_3(%arg0: i32) -> (i32, i32) {
    %c0_i32 = arith.constant 0 : i32
    %c0_i32_0 = arith.constant 0 : i32
    %c0_i32_1 = arith.constant 0 : i32
    return %c0_i32, %c0_i32_0 : i32, i32
  }
  func.func @transform_4(%arg0: i32) -> (i32, i32) {
    %c0_i32 = arith.constant 0 : i32
    %c0_i32_0 = arith.constant 0 : i32
    %c0_i32_1 = arith.constant 0 : i32
    return %c0_i32, %c0_i32_0 : i32, i32
  }
  func.func @transform_5(%arg0: i32) -> (i32, i32) {
    %c0_i32 = arith.constant 0 : i32
    %c0_i32_0 = arith.constant 0 : i32
    %c0_i32_1 = arith.constant 0 : i32
    return %c0_i32, %c0_i32_0 : i32, i32
  }
  func.func @transform_6(%arg0: i32) -> (i32, i32) {
    %c0_i32 = arith.constant 0 : i32
    %c0_i32_0 = arith.constant 0 : i32
    %c0_i32_1 = arith.constant 0 : i32
    return %c0_i32, %c0_i32_0 : i32, i32
  }
  func.func @transform_7(%arg0: i32) -> (i32, i32) {
    %c0_i32 = arith.constant 0 : i32
    %c0_i32_0 = arith.constant 0 : i32
    return %arg0, %c0_i32 : i32, i32
  }
}

</mosaic_0001>

<bundles_post_ra>
// kernel: tpu_custom_call.1
= control target key start
LH: loop header
LB: loop body
LE: loop exit
PB: predicated region body
PF: predicated region fallthrough
CT: control target
= control target key end

     0   :  { %12 = vsyncpa [#allocation3], 0  ;;  %s755_s0 = inlined_call_operand.hbm [shape: f32[8,8], index: 0, kind: input, shape index: {}]   ;;  %s756_s1 = inlined_call_operand.hbm [shape: bf16[8,128], index: 1, kind: input, shape index: {}]   ;;  %s757_s2 = inlined_call_operand.vmem [shape: f32[1,128], index: 2, kind: input, shape index: {}]   ;;  %s758_s3 = inlined_call_operand.hbm [shape: bf16[128,128], index: 3, kind: input, shape index: {}]   ;;  %s759_s4 = inlined_call_operand.vmem [shape: f32[1,128], index: 4, kind: input, shape index: {}]   ;;  %s760_s5 = inlined_call_operand.hbm [shape: bf16[128,128], index: 5, kind: input, shape index: {}]   ;;  %s761_s6 = inlined_call_operand.vmem [shape: f32[1,128], index: 6, kind: input, shape index: {}]   ;;  %s762_s7 = inlined_call_operand.hbm [shape: f32[8,128], index: 7, kind: output, shape index: {}]  }
   0x1   :  { %13 = vsyncpa [#allocation6], 0 }
   0x2   :  { %14 = vsyncpa [#allocation9], 0 }
   0x3   :  { %15 = vsyncpa [#allocation4], 0  ;;  %s614_s24 = smov [#allocation5]   ;;  %s615_s26 = smov [#allocation2]  }
   0x4   :  { %s32_s25 = sshll.u32 %s614_s24, 4  ;;  %s22_s27 = sshll.u32 %s615_s26, 4  ;;  %s33_s25 = int_to_ptr.vmem [resolvable:$true] %s32_s25  ;;  %s23_s27 = int_to_ptr.vmem [resolvable:$true] %s22_s27 }
   0x5   :  { %s496_s30 = scalar_lea.hbm %s756_s1, 64 }
   0x6   :  { %p497_p0 = scmp.ne.s32.totalorder %s756_s1, %s496_s30  ;;  %p500_p1 = scmp.lt.u32.totalorder %s496_s30, %s756_s1 }
   0x8   :  { %p502_p2 = pnand %p500_p1, %p497_p0 }
   0xa   :  { %505 = shalt.err (!%p502_p2)
}
   0xb   :  { %s506_s12 = scalar_lea.vmem %s33_s25, 64  ;;  %p511_p4 = scmp.lt.s32.totalorder %s33_s25, %s33_s25 }
   0xc   :  { %p507_p3 = scmp.ne.s32.totalorder %s33_s25, %s506_s12  ;;  %p512_p5 = scmp.lt.s32.totalorder %s506_s12, %s506_s12 }
   0xe   :  { %p513_p6 = por %p512_p5, %p511_p4 }
  0x10   :  { %p514_p7 = pnand %p513_p6, %p507_p3 }
  0x12   :  { %517 = shalt.err (!%p514_p7)
}
  0x13   :  { %35 = dma.hbm_to_vmem [thread:$0]  %s756_s1, 64, %s33_s25, [#allocation6]  }
  0x14   :  { %s518_s17 = scalar_lea.hbm %s755_s0, 128 }
  0x15   :  { %p519_p8 = scmp.ne.s32.totalorder %s755_s0, %s518_s17  ;;  %p522_p9 = scmp.lt.u32.totalorder %s518_s17, %s755_s0 }
  0x17   :  { %p524_p10 = pnand %p522_p9, %p519_p8 }
  0x19   :  { %527 = shalt.err (!%p524_p10)
}
  0x1a   :  { %s528_s22 = scalar_lea.vmem %s23_s27, 128  ;;  %p533_p12 = scmp.lt.s32.totalorder %s23_s27, %s23_s27 }
  0x1b   :  { %p529_p11 = scmp.ne.s32.totalorder %s23_s27, %s528_s22  ;;  %p534_p13 = scmp.lt.s32.totalorder %s528_s22, %s528_s22 }
  0x1d   :  { %p535_p0 = por %p534_p13, %p533_p12 }
  0x1f   :  { %p536_p1 = pnand %p535_p0, %p529_p11 }
  0x21   :  { %539 = shalt.err (!%p536_p1)
}
  0x22   :  { %25 = dma.hbm_to_vmem [thread:$0]  %s755_s0, 128, %s23_s27, [#allocation3]  }
  0x23   :  { %s616_s24 = smov [#allocation7]   ;;  %s540_s29 = scalar_lea.hbm %s758_s3, 1024 }
  0x24   :  { %s43_s25 = sshll.u32 %s616_s24, 4  ;;  %p541_p2 = scmp.ne.s32.totalorder %s758_s3, %s540_s29  ;;  %s44_s25 = int_to_ptr.vmem [resolvable:$true] %s43_s25 }
  0x25   :  { %p544_p3 = scmp.lt.u32.totalorder %s540_s29, %s758_s3 }
  0x27   :  { %p546_p4 = pnand %p544_p3, %p541_p2 }
  0x29   :  { %549 = shalt.err (!%p546_p4)
}
  0x2a   :  { %s550_s11 = scalar_lea.vmem %s44_s25, 1024  ;;  %p555_p6 = scmp.lt.s32.totalorder %s44_s25, %s44_s25 }
  0x2b   :  { %p551_p5 = scmp.ne.s32.totalorder %s44_s25, %s550_s11  ;;  %p556_p7 = scmp.lt.s32.totalorder %s550_s11, %s550_s11 }
  0x2d   :  { %p557_p8 = por %p556_p7, %p555_p6 }
  0x2f   :  { %p558_p9 = pnand %p557_p8, %p551_p5 }
  0x31   :  { %561 = shalt.err (!%p558_p9)
}
  0x32   :  { %s617_s0 = smov 64   ;;  %s618_s27 = smov 4  }
  0x33   :  { %49 = dma.hbm_to_vmem [thread:$0]  %s758_s3, 1024, %s44_s25, [#allocation6], %s617_s0, %s617_s0, %s618_s27  }
  0x34   :  { %s619_s14 = smov [#allocation8]   ;;  %s562_s18 = scalar_lea.hbm %s760_s5, 1024 }
  0x35   :  { %s57_s15 = sshll.u32 %s619_s14, 4  ;;  %p563_p10 = scmp.ne.s32.totalorder %s760_s5, %s562_s18  ;;  %s58_s15 = int_to_ptr.vmem [resolvable:$true] %s57_s15 }
  0x36   :  { %p566_p11 = scmp.lt.u32.totalorder %s562_s18, %s760_s5 }
  0x38   :  { %p568_p12 = pnand %p566_p11, %p563_p10 }
  0x3a   :  { %571 = shalt.err (!%p568_p12)
}
  0x3b   :  { %s572_s1 = scalar_lea.vmem %s58_s15, 1024  ;;  %p577_p0 = scmp.lt.s32.totalorder %s58_s15, %s58_s15 }
  0x3c   :  { %p573_p13 = scmp.ne.s32.totalorder %s58_s15, %s572_s1  ;;  %p578_p1 = scmp.lt.s32.totalorder %s572_s1, %s572_s1 }
  0x3e   :  { %p579_p2 = por %p578_p1, %p577_p0 }
  0x40   :  { %p580_p3 = pnand %p579_p2, %p573_p13 }
  0x42   :  { %583 = shalt.err (!%p580_p3)
}
  0x43   :  { %63 = dma.hbm_to_vmem [thread:$0]  %s760_s5, 1024, %s58_s15, [#allocation9], %s617_s0, %s617_s0, %s618_s27  }
  0x44   :  { %606 = dma.done.wait [#allocation3], 128  }
  0x45   :  { %607 = vsyncadd [#allocation3], 4294967168 }
  0x46   :  { %608 = dma.done.wait [#allocation6], 1088  }
  0x47   :  { %609 = vsyncadd [#allocation6], 4294966208 }
  0x48   :  { %610 = dma.done.wait [#allocation9], 1024  }
  0x49   :  { %611 = vsyncadd [#allocation9], 4294966272  ;;  %v620_v0 = vmov 0.0   ;;  %vm621_vm0 = vmmov 0   ;;  %vm93_vm1 = vcmask 1043456   ;;  %v79_v2 = vld [vmem:[#allocation2] sm:$0xff] }
  0x4a   :  { %425 = vmatprep.subr.bf16.mxu0 %v620_v0  ;;  %427 = vmatprep.mubr.msk.bf16.mxu0 %vm621_vm0, %v620_v0  ;;  %v81_v1 = vld [vmem:[#allocation5] sm:$0xf]  ;;  %v80_v4 = vpack.c.bf16 %v79_v2, %v79_v2  ;;  %v480_v5 = vld [vmem:[#allocation7] sm:$0xff]   ;;  %vm89_vm2 = vcmask 64512   ;;  %v481_v6 = vld [vmem:[#allocation7 + $0x8] sm:$0xff]   ;;  %s622_s29 = smov [#allocation10]  }
  0x4b   :  { %431 = vmatprep.subr.bf16.mxu1 %v620_v0  ;;  %447 = vmatprep.mubr.msk.bf16.mxu1 %vm621_vm0, %v620_v0  ;;  %v95_v3 = vsel %vm93_vm1, %v81_v1, 0  ;;  %v482_v7 = vld [vmem:[#allocation7 + $0x10] sm:$0xff]   ;;  %v483_v8 = vld [vmem:[#allocation7 + $0x18] sm:$0xff]   ;;  %v484_v9 = vld [vmem:[#allocation7 + $0x20] sm:$0xff]   ;;  %s374_s30 = sshll.u32 %s622_s29, 4  ;;  %s375_s30 = int_to_ptr.vmem [resolvable:$true] %s374_s30 }
  0x4c   :  { %426 = vmatpush3.bf16.msra.mxu0 %v95_v3  ;;  %432 = vmatpush3.bf16.msra.mxu1 %v480_v5  ;;  %v485_v10 = vld [vmem:[#allocation7 + $0x28] sm:$0xff]   ;;  %v486_v11 = vld [vmem:[#allocation7 + $0x30] sm:$0xff]   ;;  %v487_v12 = vld [vmem:[#allocation7 + $0x38] sm:$0xff]   ;;  %p589_p5 = scmp.lt.s32.totalorder %s375_s30, %s375_s30 }
  0x4d   :  { %451 = vmatprep.subr.bf16.mxu0 %v620_v0  ;;  %433 = vmatprep.subr.bf16.mxu1 %v620_v0  ;;  %v488_v13 = vld [vmem:[#allocation8] sm:$0xff]   ;;  %v489_v14 = vld [vmem:[#allocation8 + $0x8] sm:$0xff]   ;;  %v490_v15 = vld [vmem:[#allocation8 + $0x10] sm:$0xff]  }
  0x4e   :  { %v491_v16 = vld [vmem:[#allocation8 + $0x18] sm:$0xff]   ;;  %v492_v17 = vld [vmem:[#allocation8 + $0x20] sm:$0xff]   ;;  %v493_v18 = vld [vmem:[#allocation8 + $0x28] sm:$0xff]  }
  0x4f   :  { %428 = vmatmul.mubr.msk.bf16.vlgmr.msra.gmra.mrb[0].mxu0 %vm89_vm2, %v80_v4  ;;  %v385_v19 = vld [vmem:[%s757_s2] ss:$0 sm:$0xff]  ;;  %v495_v29 = vld [vmem:[#allocation8 + $0x38] sm:$0xff]  }
  0x50   :  { %467 = vmatprep.mubr.msk.bf16.mxu0 %vm621_vm0, %v620_v0  ;;  %434 = vmatpush3.bf16.msra.mxu1 %v481_v6  ;;  %v494_v28 = vld [vmem:[#allocation8 + $0x30] sm:$0xff]  }
  0x51   :  { %435 = vmatprep.subr.bf16.mxu1 %v620_v0  ;;  %452 = vmatpush3.bf16.msra.mxu0 %v488_v13  ;;  %v387_v30 = vld [vmem:[%s759_s4] ss:$0 sm:$0xff]  ;;  %s584_s4 = scalar_lea.vmem %s375_s30, 128 }
  0x52   :  { %453 = vmatprep.subr.bf16.mxu0 %v620_v0  ;;  %v396_v39 = vld [vmem:[%s761_s6] ss:$0 sm:$0xff]  ;;  %p585_p4 = scmp.ne.s32.totalorder %s375_s30, %s584_s4  ;;  %p590_p6 = scmp.lt.s32.totalorder %s584_s4, %s584_s4 }
  0x54   :  { %436 = vmatpush3.bf16.msra.mxu1 %v482_v7  ;;  %p591_p7 = por %p590_p6, %p589_p5 }
  0x55   :  { %437 = vmatprep.subr.bf16.mxu1 %v620_v0  ;;  %454 = vmatpush3.bf16.msra.mxu0 %v489_v14 }
  0x56   :  { %455 = vmatprep.subr.bf16.mxu0 %v620_v0  ;;  %p592_p8 = pnand %p591_p7, %p585_p4 }
  0x58   :  { %438 = vmatpush3.bf16.msra.mxu1 %v483_v8 }
  0x59   :  { %439 = vmatprep.subr.bf16.mxu1 %v620_v0  ;;  %456 = vmatpush3.bf16.msra.mxu0 %v490_v15 }
  0x5a   :  { %457 = vmatprep.subr.bf16.mxu0 %v620_v0 }
  0x5c   :  { %440 = vmatpush3.bf16.msra.mxu1 %v484_v9 }
  0x5d   :  { %441 = vmatprep.subr.bf16.mxu1 %v620_v0  ;;  %458 = vmatpush3.bf16.msra.mxu0 %v491_v16 }
  0x5e   :  { %459 = vmatprep.subr.bf16.mxu0 %v620_v0 }
  0x60   :  { %442 = vmatpush3.bf16.msra.mxu1 %v485_v10 }
  0x61   :  { %443 = vmatprep.subr.bf16.mxu1 %v620_v0  ;;  %460 = vmatpush3.bf16.msra.mxu0 %v492_v17 }
  0x62   :  { %461 = vmatprep.subr.bf16.mxu0 %v620_v0 }
  0x64   :  { %444 = vmatpush3.bf16.msra.mxu1 %v486_v11 }
  0x65   :  { %445 = vmatprep.subr.bf16.mxu1 %v620_v0  ;;  %462 = vmatpush3.bf16.msra.mxu0 %v493_v18 }
  0x66   :  { %463 = vmatprep.subr.bf16.mxu0 %v620_v0 }
  0x68   :  { %446 = vmatpush3.bf16.msra.mxu1 %v487_v12 }
  0x69   :  { %464 = vmatpush3.bf16.msra.mxu0 %v494_v28 }
  0x6a   :  { %465 = vmatprep.subr.bf16.mxu0 %v620_v0 }
  0x6d   :  { %466 = vmatpush3.bf16.msra.mxu0 %v495_v29 }
 0x122   :  { %v131_v20 = vpop.f32.mrb[0].mxu0 }
 0x123   :  { %v132_v21 = vadd.f32 %v385_v19, %v131_v20  ;;  %v429_v22 = vpop.f32.mrb[1].mxu0 }
 0x124   :  { %v134_v23 = vpop.f32.mrb[2].mxu0 }
 0x125   :  { %vm137_vm3 = vcmp.gt.f32.partialorder %v132_v21, 0.0  ;;  %v138_v24 = vmul.f32 0.01, %v132_v21  ;;  %v430_v25 = vpop.f32.mrb[3].mxu0 }
 0x127   :  { %v139_v26 = vsel %vm137_vm3, %v132_v21, %v138_v24 }
 0x128   :  { %v140_v27 = vpack.c.bf16 %v139_v26, %v139_v26 }
 0x12a   :  { %448 = vmatmul.mubr.bf16.vlgmr.msra.gmra.mrb[0].mxu1 %v140_v27 }
 0x1fd   :  { %v246_v31 = vpop.f32.mrb[0].mxu1 }
 0x1fe   :  { %v247_v32 = vadd.f32 %v387_v30, %v246_v31  ;;  %v449_v33 = vpop.f32.mrb[1].mxu1 }
 0x1ff   :  { %v249_v34 = vpop.f32.mrb[2].mxu1 }
 0x200   :  { %vm252_vm4 = vcmp.gt.f32.partialorder %v247_v32, 0.0  ;;  %v253_v35 = vmul.f32 0.01, %v247_v32  ;;  %v450_v36 = vpop.f32.mrb[3].mxu1 }
 0x202   :  { %v254_v37 = vsel %vm252_vm4, %v247_v32, %v253_v35 }
 0x203   :  { %v255_v38 = vpack.c.bf16 %v254_v37, %v254_v37 }
 0x205   :  { %468 = vmatmul.mubr.bf16.vlgmr.msra.gmra.mrb[4].mxu0 %v255_v38 }
 0x2d8   :  { %v361_v40 = vpop.f32.mrb[4].mxu0 }
 0x2d9   :  { %v362_v41 = vadd.f32 %v396_v39, %v361_v40  ;;  %v469_v42 = vpop.f32.mrb[5].mxu0 }
 0x2da   :  { %v364_v43 = vpop.f32.mrb[6].mxu0 }
 0x2db   :  { %367 = vst [vmem:[#allocation10] sm:$0xff] %v362_v41  ;;  %v470_v44 = vpop.f32.mrb[7].mxu0 }
 0x2dc   :  { %595 = shalt.err (!%p592_p8)
}
 0x2dd   :  { %s596_s6 = scalar_lea.hbm %s762_s7, 128 }
 0x2de   :  { %p597_p9 = scmp.ne.s32.totalorder %s762_s7, %s596_s6  ;;  %p600_p10 = scmp.lt.u32.totalorder %s596_s6, %s762_s7 }
 0x2e0   :  { %p602_p11 = pnand %p600_p10, %p597_p9 }
 0x2e2   :  { %605 = shalt.err (!%p602_p11)
}
 0x2e3   :  { %377 = dma.vmem_to_hbm [thread:$0]  %s375_s30, 128, %s762_s7, [#allocation4]  }
 0x2e4   :  { %612 = dma.done.wait [#allocation4], 128  }
 0x2e5   :  { %613 = vsyncadd [#allocation4], 4294967168 }
 0x2e6   :  { %381 = vsyncpa [#allocation3], 1 }
 0x2e7   :  { %382 = vsyncpa [#allocation6], 1 }
 0x2e8   :  { %383 = vsyncpa [#allocation9], 1 }
 0x2e9   :  { %384 = vsyncpa [#allocation4], 1 }

</bundles_post_ra>
